<compile_context>
chip_gen: v7x
topology: tpu7x:2x2x1
jax: 0.10.0
libtpu: 0.0.40
codegen_flags: <defaults>
</compile_context>

<pallas_src>
import functools
import math

import jax
import jax.numpy as jnp
from jax.experimental import pallas as pl
from jax.experimental.pallas import tpu as pltpu

_LANE = 128
_SUBLANE = 8


def _eirnn_net_kernel(x_ref, win_ref, bc_ref, wh_ref, wfc_ref, bfc_ref,
                      out_ref, act_ref, *, T, B):
    """Whole-sequence EI-RNN forward in one invocation.

    x_ref  : (T*B, I)    all time steps, batch-padded & flattened
    win_ref: (I, Hp)     input->hidden weight (pre-transposed, lane-padded)
    bc_ref : (1, Hp)     b_in + b_h2h (folded, lane-padded with zeros)
    wh_ref : (Hp, Hp)    hidden->hidden weight (pre-transposed, zero-padded)
    wfc_ref: (Hp, Op), bfc_ref: (1, Op)   readout (zero-padded)
    out_ref: (T*B, Op),  act_ref: (T*B, Hp)   lane-dense outputs
    """
    Hp = wh_ref.shape[0]

    # Batched input projection for every time step at once (no sequential dep):
    # one (T*B, I) @ (I, Hp) matmul + folded bias instead of T tiny ones.
    xproj = (
        jnp.dot(x_ref[...], win_ref[...], preferred_element_type=jnp.float32)
        + bc_ref[...]
    )

    wh = wh_ref[...]                        # load recurrent weight once
    h = jnp.zeros((B, Hp), jnp.float32)     # hidden carry (alpha=1 -> state==total)
    for t in range(T):                      # static trip count (T small)
        total = xproj[t * B:(t + 1) * B, :] + jnp.dot(
            h, wh, preferred_element_type=jnp.float32)
        h = jnp.maximum(total, 0.0)         # relu
        # Per-step store: t*B is a static multiple of 8 sublanes, Hp is a
        # multiple of 128 lanes -> full-width unmasked store.
        act_ref[pl.ds(t * B, B), :] = h

    # Readout hoisted out of the recurrence: single (T*B, Hp) @ (Hp, Op) matmul,
    # reading the activations back from the just-written VMEM output buffer.
    acts = act_ref[...]
    out_ref[...] = (
        jnp.dot(acts, wfc_ref[...], preferred_element_type=jnp.float32)
        + bfc_ref[...]
    )


def pad_params_for_kernel(params):
    """One-time prep: fold biases, zero-pad hidden/output dims to 128 lanes.

    Zero padding is required for correctness of the slicing: padded hidden
    units receive 0 input + 0 bias, stay 0 through ReLU, and contribute 0 to
    padded (and real) output columns.
    """
    win, bin_, wh, bh, wfc, bfc = params
    I, H = win.shape
    O = wfc.shape[1]
    Hp = max(_LANE, ((H + _LANE - 1) // _LANE) * _LANE)
    Op = max(_LANE, ((O + _LANE - 1) // _LANE) * _LANE)

    win_p = jnp.zeros((I, Hp), jnp.float32).at[:, :H].set(win)
    bc_p = jnp.zeros((1, Hp), jnp.float32).at[0, :H].set(bin_ + bh)
    wh_p = jnp.zeros((Hp, Hp), jnp.float32).at[:H, :H].set(wh)
    wfc_p = jnp.zeros((Hp, Op), jnp.float32).at[:H, :O].set(wfc)
    bfc_p = jnp.zeros((1, Op), jnp.float32).at[0, :O].set(bfc)

    padded = (win_p, bc_p, wh_p, wfc_p, bfc_p)
    return padded, (H, O, Hp, Op)


def eirnn_net_forward(x, padded_params, dims):
    """x: (T, B, I) float32. Returns (out (T,B,O), rnn_activity (T,B,H))."""
    T, B, I = x.shape
    win_p, bc_p, wh_p, wfc_p, bfc_p = padded_params
    H, O, Hp, Op = dims

    # Pad batch to a multiple of 8 sublanes; padded rows evolve independently
    # (row-wise-independent recurrence) and are sliced off afterwards.
    Bp = ((B + _SUBLANE - 1) // _SUBLANE) * _SUBLANE
    x_p = jnp.pad(x, ((0, 0), (0, Bp - B), (0, 0))) if Bp != B else x
    x2d = x_p.reshape(T * Bp, I)

    flops = 2 * T * Bp * (I * Hp + Hp * Hp + Hp * Op)
    bytes_accessed = 4 * (T * Bp * I + I * Hp + Hp + Hp * Hp + Hp * Op + Op
                          + T * Bp * Op + T * Bp * Hp)

    vmem_specs = [pl.BlockSpec(memory_space=pltpu.MemorySpace.VMEM)
                  for _ in range(6)]

    out2d, act2d = pl.pallas_call(
        functools.partial(_eirnn_net_kernel, T=T, B=Bp),
        out_shape=(
            jax.ShapeDtypeStruct((T * Bp, Op), jnp.float32),
            jax.ShapeDtypeStruct((T * Bp, Hp), jnp.float32),
        ),
        in_specs=vmem_specs,
        out_specs=(
            pl.BlockSpec(memory_space=pltpu.MemorySpace.VMEM),
            pl.BlockSpec(memory_space=pltpu.MemorySpace.VMEM),
        ),
        cost_estimate=pl.CostEstimate(
            flops=flops, transcendentals=0, bytes_accessed=bytes_accessed),
        compiler_params=pltpu.CompilerParams(
            vmem_limit_bytes=32 * 1024 * 1024),
    )(x2d, win_p, bc_p, wh_p, wfc_p, bfc_p)

    out = out2d.reshape(T, Bp, Op)[:, :B, :O]
    act = act2d.reshape(T, Bp, Hp)[:, :B, :H]
    return out, act


def init_params(key, input_size, hidden_size, output_size):
    """Deterministic kaiming_uniform(a=sqrt(5))-style init (matches Net shapes)."""
    ks = jax.random.split(key, 6)

    def kaiming_uniform(k, out_f, in_f):
        gain = math.sqrt(2.0 / (1.0 + 5.0))          # a = sqrt(5)
        bound = gain * math.sqrt(3.0 / in_f)
        return jax.random.uniform(k, (out_f, in_f), jnp.float32, -bound, bound)

    def bias_init(k, in_f, out_f):
        bound = 1.0 / math.sqrt(in_f)
        return jax.random.uniform(k, (out_f,), jnp.float32, -bound, bound)

    # nn.Linear(input_size, hidden_size)
    w_in = kaiming_uniform(ks[0], hidden_size, input_size)
    b_in = bias_init(ks[1], input_size, hidden_size)
    # EIRecLinear(hidden, mode='none') -> effective_weight() == raw weight
    w_h2h = kaiming_uniform(ks[2], hidden_size, hidden_size)
    b_h2h = bias_init(ks[3], hidden_size, hidden_size)
    # nn.Linear(hidden_size, output_size)   (mode == 'none')
    w_fc = kaiming_uniform(ks[4], output_size, hidden_size)
    b_fc = bias_init(ks[5], hidden_size, output_size)

    # Pre-transpose weights so the kernel does x @ W (F.linear is x @ W.T).
    return (w_in.T, b_in, w_h2h.T, b_h2h, w_fc.T, b_fc)


def reference_forward(x, params):
    """Pure-JAX reference mirroring the PyTorch forward (defaults)."""
    win, bin_, wh, bh, wfc, bfc = params
    T, B, _ = x.shape
    H = win.shape[1]
    out_h = jnp.zeros((B, H), jnp.float32)
    acts = []
    for t in range(T):
        total = x[t] @ win + bin_ + out_h @ wh + bh
        out_h = jnp.maximum(total, 0.0)      # alpha = 1 -> state == total
        acts.append(out_h)
    act = jnp.stack(acts, axis=0)
    out = act @ wfc + bfc
    return out, act


if __name__ == "__main__":
    seq_len, batch, input_size, hidden_size, output_size = 8, 4, 8, 32, 4

    key = jax.random.PRNGKey(0)
    kx, kp = jax.random.split(key)
    x = jax.random.normal(kx, (seq_len, batch, input_size), jnp.float32)
    params = init_params(kp, input_size, hidden_size, output_size)

    # One-time weight prep (fold biases, pad H/O to lane-dense 128 widths).
    padded_params, dims = pad_params_for_kernel(params)

    out, act = eirnn_net_forward(x, padded_params, dims)
    out = jax.block_until_ready(out)
    act = jax.block_until_ready(act)

    ref_out, ref_act = reference_forward(x, params)
    assert out.shape == (seq_len, batch, output_size)
    assert act.shape == (seq_len, batch, hidden_size)
    assert jnp.allclose(out, ref_out, atol=1e-5, rtol=1e-5)
    assert jnp.allclose(act, ref_act, atol=1e-5, rtol=1e-5)

    print("KERNEL_OK")
</pallas_src>

<mosaic_0001>
module attributes {stable_mosaic.version = 11 : i64} {
  func.func @_eirnn_net_kernel(%arg0: memref<64x8xf32, #tpu.memory_space<vmem>>, %arg1: memref<8x128xf32, #tpu.memory_space<vmem>>, %arg2: memref<1x128xf32, #tpu.memory_space<vmem>>, %arg3: memref<128x128xf32, #tpu.memory_space<vmem>>, %arg4: memref<128x128xf32, #tpu.memory_space<vmem>>, %arg5: memref<1x128xf32, #tpu.memory_space<vmem>>, %arg6: memref<64x128xf32, #tpu.memory_space<vmem>>, %arg7: memref<64x128xf32, #tpu.memory_space<vmem>>) attributes {dimension_semantics = [], scalar_prefetch = 0 : i64, scratch_operands = 0 : i64, tpu.core_type = #tpu.core_type<tc>} {
    %c0 = arith.constant 0 : index
    %c0_0 = arith.constant 0 : index
    %0 = vector.load %arg0[%c0, %c0_0] : memref<64x8xf32, #tpu.memory_space<vmem>>, vector<64x8xf32>
    %c0_1 = arith.constant 0 : index
    %c0_2 = arith.constant 0 : index
    %1 = vector.load %arg1[%c0_1, %c0_2] : memref<8x128xf32, #tpu.memory_space<vmem>>, vector<8x128xf32>
    %cst = arith.constant dense<0.000000e+00> : vector<64x128xf32>
    %2 = tpu.matmul %0, %1, %cst {dimension_numbers = #tpu.dot_dimension_numbers<[1], [0], [0], [1], [0, 0, 1, 1], [], []>} : vector<64x8xf32>, vector<8x128xf32>, vector<64x128xf32> -> vector<64x128xf32>
    %c0_3 = arith.constant 0 : index
    %c0_4 = arith.constant 0 : index
    %3 = vector.load %arg2[%c0_3, %c0_4] : memref<1x128xf32, #tpu.memory_space<vmem>>, vector<1x128xf32>
    %4 = vector.broadcast %3 : vector<1x128xf32> to vector<64x128xf32>
    %5 = arith.addf %2, %4 : vector<64x128xf32>
    %c0_5 = arith.constant 0 : index
    %c0_6 = arith.constant 0 : index
    %6 = vector.load %arg3[%c0_5, %c0_6] : memref<128x128xf32, #tpu.memory_space<vmem>>, vector<128x128xf32>
    %cst_7 = arith.constant 0.000000e+00 : f32
    %7 = vector.broadcast %cst_7 : f32 to vector<8x128xf32>
    %8 = vector.extract_strided_slice %5 {offsets = [0, 0], sizes = [8, 128], strides = [1, 1]} : vector<64x128xf32> to vector<8x128xf32>
    %cst_8 = arith.constant dense<0.000000e+00> : vector<8x128xf32>
    %9 = tpu.matmul %7, %6, %cst_8 {dimension_numbers = #tpu.dot_dimension_numbers<[1], [0], [0], [1], [0, 0, 1, 1], [], []>} : vector<8x128xf32>, vector<128x128xf32>, vector<8x128xf32> -> vector<8x128xf32>
    %10 = arith.addf %8, %9 : vector<8x128xf32>
    %cst_9 = arith.constant 0.000000e+00 : f32
    %11 = vector.broadcast %cst_9 : f32 to vector<8x128xf32>
    %12 = arith.maximumf %10, %11 : vector<8x128xf32>
    %c0_10 = arith.constant 0 : index
    %c0_11 = arith.constant 0 : index
    %13 = vector.load %arg7[%c0_10, %c0_11] : memref<64x128xf32, #tpu.memory_space<vmem>>, vector<8x128xf32>
    tpu.vector_store %arg7[%c0_10, %c0_11], %12 {strides = array<i32>} : memref<64x128xf32, #tpu.memory_space<vmem>>, vector<8x128xf32>,
    %14 = vector.extract_strided_slice %5 {offsets = [8, 0], sizes = [8, 128], strides = [1, 1]} : vector<64x128xf32> to vector<8x128xf32>
    %cst_12 = arith.constant dense<0.000000e+00> : vector<8x128xf32>
    %15 = tpu.matmul %12, %6, %cst_12 {dimension_numbers = #tpu.dot_dimension_numbers<[1], [0], [0], [1], [0, 0, 1, 1], [], []>} : vector<8x128xf32>, vector<128x128xf32>, vector<8x128xf32> -> vector<8x128xf32>
    %16 = arith.addf %14, %15 : vector<8x128xf32>
    %cst_13 = arith.constant 0.000000e+00 : f32
    %17 = vector.broadcast %cst_13 : f32 to vector<8x128xf32>
    %18 = arith.maximumf %16, %17 : vector<8x128xf32>
    %c8 = arith.constant 8 : index
    %c0_14 = arith.constant 0 : index
    %19 = vector.load %arg7[%c8, %c0_14] : memref<64x128xf32, #tpu.memory_space<vmem>>, vector<8x128xf32>
    tpu.vector_store %arg7[%c8, %c0_14], %18 {strides = array<i32>} : memref<64x128xf32, #tpu.memory_space<vmem>>, vector<8x128xf32>,
    %20 = vector.extract_strided_slice %5 {offsets = [16, 0], sizes = [8, 128], strides = [1, 1]} : vector<64x128xf32> to vector<8x128xf32>
    %cst_15 = arith.constant dense<0.000000e+00> : vector<8x128xf32>
    %21 = tpu.matmul %18, %6, %cst_15 {dimension_numbers = #tpu.dot_dimension_numbers<[1], [0], [0], [1], [0, 0, 1, 1], [], []>} : vector<8x128xf32>, vector<128x128xf32>, vector<8x128xf32> -> vector<8x128xf32>
    %22 = arith.addf %20, %21 : vector<8x128xf32>
    %cst_16 = arith.constant 0.000000e+00 : f32
    %23 = vector.broadcast %cst_16 : f32 to vector<8x128xf32>
    %24 = arith.maximumf %22, %23 : vector<8x128xf32>
    %c16 = arith.constant 16 : index
    %c0_17 = arith.constant 0 : index
    %25 = vector.load %arg7[%c16, %c0_17] : memref<64x128xf32, #tpu.memory_space<vmem>>, vector<8x128xf32>
    tpu.vector_store %arg7[%c16, %c0_17], %24 {strides = array<i32>} : memref<64x128xf32, #tpu.memory_space<vmem>>, vector<8x128xf32>,
    %26 = vector.extract_strided_slice %5 {offsets = [24, 0], sizes = [8, 128], strides = [1, 1]} : vector<64x128xf32> to vector<8x128xf32>
    %cst_18 = arith.constant dense<0.000000e+00> : vector<8x128xf32>
    %27 = tpu.matmul %24, %6, %cst_18 {dimension_numbers = #tpu.dot_dimension_numbers<[1], [0], [0], [1], [0, 0, 1, 1], [], []>} : vector<8x128xf32>, vector<128x128xf32>, vector<8x128xf32> -> vector<8x128xf32>
    %28 = arith.addf %26, %27 : vector<8x128xf32>
    %cst_19 = arith.constant 0.000000e+00 : f32
    %29 = vector.broadcast %cst_19 : f32 to vector<8x128xf32>
    %30 = arith.maximumf %28, %29 : vector<8x128xf32>
    %c24 = arith.constant 24 : index
    %c0_20 = arith.constant 0 : index
    %31 = vector.load %arg7[%c24, %c0_20] : memref<64x128xf32, #tpu.memory_space<vmem>>, vector<8x128xf32>
    tpu.vector_store %arg7[%c24, %c0_20], %30 {strides = array<i32>} : memref<64x128xf32, #tpu.memory_space<vmem>>, vector<8x128xf32>,
    %32 = vector.extract_strided_slice %5 {offsets = [32, 0], sizes = [8, 128], strides = [1, 1]} : vector<64x128xf32> to vector<8x128xf32>
    %cst_21 = arith.constant dense<0.000000e+00> : vector<8x128xf32>
    %33 = tpu.matmul %30, %6, %cst_21 {dimension_numbers = #tpu.dot_dimension_numbers<[1], [0], [0], [1], [0, 0, 1, 1], [], []>} : vector<8x128xf32>, vector<128x128xf32>, vector<8x128xf32> -> vector<8x128xf32>
    %34 = arith.addf %32, %33 : vector<8x128xf32>
    %cst_22 = arith.constant 0.000000e+00 : f32
    %35 = vector.broadcast %cst_22 : f32 to vector<8x128xf32>
    %36 = arith.maximumf %34, %35 : vector<8x128xf32>
    %c32 = arith.constant 32 : index
    %c0_23 = arith.constant 0 : index
    %37 = vector.load %arg7[%c32, %c0_23] : memref<64x128xf32, #tpu.memory_space<vmem>>, vector<8x128xf32>
    tpu.vector_store %arg7[%c32, %c0_23], %36 {strides = array<i32>} : memref<64x128xf32, #tpu.memory_space<vmem>>, vector<8x128xf32>,
    %38 = vector.extract_strided_slice %5 {offsets = [40, 0], sizes = [8, 128], strides = [1, 1]} : vector<64x128xf32> to vector<8x128xf32>
    %cst_24 = arith.constant dense<0.000000e+00> : vector<8x128xf32>
    %39 = tpu.matmul %36, %6, %cst_24 {dimension_numbers = #tpu.dot_dimension_numbers<[1], [0], [0], [1], [0, 0, 1, 1], [], []>} : vector<8x128xf32>, vector<128x128xf32>, vector<8x128xf32> -> vector<8x128xf32>
    %40 = arith.addf %38, %39 : vector<8x128xf32>
    %cst_25 = arith.constant 0.000000e+00 : f32
    %41 = vector.broadcast %cst_25 : f32 to vector<8x128xf32>
    %42 = arith.maximumf %40, %41 : vector<8x128xf32>
    %c40 = arith.constant 40 : index
    %c0_26 = arith.constant 0 : index
    %43 = vector.load %arg7[%c40, %c0_26] : memref<64x128xf32, #tpu.memory_space<vmem>>, vector<8x128xf32>
    tpu.vector_store %arg7[%c40, %c0_26], %42 {strides = array<i32>} : memref<64x128xf32, #tpu.memory_space<vmem>>, vector<8x128xf32>,
    %44 = vector.extract_strided_slice %5 {offsets = [48, 0], sizes = [8, 128], strides = [1, 1]} : vector<64x128xf32> to vector<8x128xf32>
    %cst_27 = arith.constant dense<0.000000e+00> : vector<8x128xf32>
    %45 = tpu.matmul %42, %6, %cst_27 {dimension_numbers = #tpu.dot_dimension_numbers<[1], [0], [0], [1], [0, 0, 1, 1], [], []>} : vector<8x128xf32>, vector<128x128xf32>, vector<8x128xf32> -> vector<8x128xf32>
    %46 = arith.addf %44, %45 : vector<8x128xf32>
    %cst_28 = arith.constant 0.000000e+00 : f32
    %47 = vector.broadcast %cst_28 : f32 to vector<8x128xf32>
    %48 = arith.maximumf %46, %47 : vector<8x128xf32>
    %c48 = arith.constant 48 : index
    %c0_29 = arith.constant 0 : index
    %49 = vector.load %arg7[%c48, %c0_29] : memref<64x128xf32, #tpu.memory_space<vmem>>, vector<8x128xf32>
    tpu.vector_store %arg7[%c48, %c0_29], %48 {strides = array<i32>} : memref<64x128xf32, #tpu.memory_space<vmem>>, vector<8x128xf32>,
    %50 = vector.extract_strided_slice %5 {offsets = [56, 0], sizes = [8, 128], strides = [1, 1]} : vector<64x128xf32> to vector<8x128xf32>
    %cst_30 = arith.constant dense<0.000000e+00> : vector<8x128xf32>
    %51 = tpu.matmul %48, %6, %cst_30 {dimension_numbers = #tpu.dot_dimension_numbers<[1], [0], [0], [1], [0, 0, 1, 1], [], []>} : vector<8x128xf32>, vector<128x128xf32>, vector<8x128xf32> -> vector<8x128xf32>
    %52 = arith.addf %50, %51 : vector<8x128xf32>
    %cst_31 = arith.constant 0.000000e+00 : f32
    %53 = vector.broadcast %cst_31 : f32 to vector<8x128xf32>
    %54 = arith.maximumf %52, %53 : vector<8x128xf32>
    %c56 = arith.constant 56 : index
    %c0_32 = arith.constant 0 : index
    %55 = vector.load %arg7[%c56, %c0_32] : memref<64x128xf32, #tpu.memory_space<vmem>>, vector<8x128xf32>
    tpu.vector_store %arg7[%c56, %c0_32], %54 {strides = array<i32>} : memref<64x128xf32, #tpu.memory_space<vmem>>, vector<8x128xf32>,
    %c0_33 = arith.constant 0 : index
    %c0_34 = arith.constant 0 : index
    %56 = vector.load %arg7[%c0_33, %c0_34] : memref<64x128xf32, #tpu.memory_space<vmem>>, vector<64x128xf32>
    %c0_35 = arith.constant 0 : index
    %c0_36 = arith.constant 0 : index
    %57 = vector.load %arg4[%c0_35, %c0_36] : memref<128x128xf32, #tpu.memory_space<vmem>>, vector<128x128xf32>
    %cst_37 = arith.constant dense<0.000000e+00> : vector<64x128xf32>
    %58 = tpu.matmul %56, %57, %cst_37 {dimension_numbers = #tpu.dot_dimension_numbers<[1], [0], [0], [1], [0, 0, 1, 1], [], []>} : vector<64x128xf32>, vector<128x128xf32>, vector<64x128xf32> -> vector<64x128xf32>
    %c0_38 = arith.constant 0 : index
    %c0_39 = arith.constant 0 : index
    %59 = vector.load %arg5[%c0_38, %c0_39] : memref<1x128xf32, #tpu.memory_space<vmem>>, vector<1x128xf32>
    %60 = vector.broadcast %59 : vector<1x128xf32> to vector<64x128xf32>
    %61 = arith.addf %58, %60 : vector<64x128xf32>
    %c0_40 = arith.constant 0 : index
    %c0_41 = arith.constant 0 : index
    %62 = vector.load %arg6[%c0_40, %c0_41] : memref<64x128xf32, #tpu.memory_space<vmem>>, vector<64x128xf32>
    tpu.vector_store %arg6[%c0_40, %c0_41], %61 {strides = array<i32>} : memref<64x128xf32, #tpu.memory_space<vmem>>, vector<64x128xf32>,
    return
  }
}

</mosaic_0001>

<bundles_post_ra>
// kernel: tpu_custom_call.1
= control target key start
LH: loop header
LB: loop body
LE: loop exit
PB: predicated region body
PF: predicated region fallthrough
CT: control target
= control target key end

     0   :  { %13 = vsyncpa [#allocation3], 0  ;;  %s2183_s0 = inlined_call_operand.vmem [shape: f32[64,8], index: 0, kind: input, shape index: {}]   ;;  %s2184_s1 = inlined_call_operand.vmem [shape: f32[8,128], index: 1, kind: input, shape index: {}]   ;;  %s2185_s2 = inlined_call_operand.vmem [shape: f32[1,128], index: 2, kind: input, shape index: {}]   ;;  %s2186_s3 = inlined_call_operand.hbm [shape: f32[128,128], index: 3, kind: input, shape index: {}]   ;;  %s2187_s4 = inlined_call_operand.hbm [shape: f32[128,128], index: 4, kind: input, shape index: {}]   ;;  %s2188_s5 = inlined_call_operand.vmem [shape: f32[1,128], index: 5, kind: input, shape index: {}]   ;;  %s2189_s6 = inlined_call_operand.hbm [shape: f32[64,128], index: 6, kind: output, shape index: {0}]   ;;  %s2190_s7 = inlined_call_operand.hbm [shape: f32[64,128], index: 7, kind: output, shape index: {1}]  }
   0x1   :  { %14 = vsyncpa [#allocation6], 0 }
   0x2   :  { %15 = vsyncpa [#allocation4], 0 }
   0x3   :  { %16 = vsyncpa [#allocation9], 0  ;;  %s1825_s24 = smov [#allocation2]   ;;  %s1729_s28 = scalar_lea.hbm %s2186_s3, 2048 }
   0x4   :  { %s28_s25 = sshll.u32 %s1825_s24, 4  ;;  %p1730_p0 = scmp.ne.s32.totalorder %s2186_s3, %s1729_s28  ;;  %s29_s25 = int_to_ptr.vmem [resolvable:$true] %s28_s25 }
   0x5   :  { %p1733_p1 = scmp.lt.u32.totalorder %s1729_s28, %s2186_s3 }
   0x7   :  { %p1735_p2 = pnand %p1733_p1, %p1730_p0 }
   0x9   :  { %1738 = shalt.err (!%p1735_p2)
}
   0xa   :  { %s1739_s10 = scalar_lea.vmem %s29_s25, 2048  ;;  %p1744_p4 = scmp.lt.s32.totalorder %s29_s25, %s29_s25 }
   0xb   :  { %p1740_p3 = scmp.ne.s32.totalorder %s29_s25, %s1739_s10  ;;  %p1745_p5 = scmp.lt.s32.totalorder %s1739_s10, %s1739_s10 }
   0xd   :  { %p1746_p6 = por %p1745_p5, %p1744_p4 }
   0xf   :  { %p1747_p7 = pnand %p1746_p6, %p1740_p3 }
  0x11   :  { %1750 = shalt.err (!%p1747_p7)
}
  0x12   :  { %s1826_s11 = smov 128   ;;  %s1827_s12 = smov 8  }
  0x13   :  { %34 = dma.hbm_to_vmem [thread:$0]  %s2186_s3, 2048, %s29_s25, [#allocation3], %s1826_s11, %s1826_s11, %s1827_s12  }
  0x14   :  { %s1828_s15 = smov [#allocation5]   ;;  %s1751_s19 = scalar_lea.hbm %s2187_s4, 2048 }
  0x15   :  { %s40_s16 = sshll.u32 %s1828_s15, 4  ;;  %p1752_p8 = scmp.ne.s32.totalorder %s2187_s4, %s1751_s19  ;;  %s41_s16 = int_to_ptr.vmem [resolvable:$true] %s40_s16 }
  0x16   :  { %p1755_p9 = scmp.lt.u32.totalorder %s1751_s19, %s2187_s4 }
  0x18   :  { %p1757_p10 = pnand %p1755_p9, %p1752_p8 }
  0x1a   :  { %1760 = shalt.err (!%p1757_p10)
}
  0x1b   :  { %s1761_s24 = scalar_lea.vmem %s41_s16, 2048  ;;  %p1766_p12 = scmp.lt.s32.totalorder %s41_s16, %s41_s16 }
  0x1c   :  { %p1762_p11 = scmp.ne.s32.totalorder %s41_s16, %s1761_s24  ;;  %p1767_p13 = scmp.lt.s32.totalorder %s1761_s24, %s1761_s24 }
  0x1e   :  { %p1768_p0 = por %p1767_p13, %p1766_p12 }
  0x20   :  { %p1769_p1 = pnand %p1768_p0, %p1762_p11 }
  0x22   :  { %1772 = shalt.err (!%p1769_p1)
}
  0x23   :  { %46 = dma.hbm_to_vmem [thread:$0]  %s2187_s4, 2048, %s41_s16, [#allocation6], %s1826_s11, %s1826_s11, %s1827_s12  }
  0x24   :  { %1817 = dma.done.wait [#allocation3], 2048  }
  0x25   :  { %1818 = vsyncadd [#allocation3], 4294965248 }
  0x26   :  { %1819 = dma.done.wait [#allocation6], 2048  }
  0x27   :  { %1820 = vsyncadd [#allocation6], 4294965248  ;;  %v1829_v0 = vmov 0.0|0.0   ;;  %vm1830_vm0 = vmmov 0   ;;  %v1831_v1 = vmov 0.0   ;;  %v201_v2 = vld [vmem:[#allocation2] sm:$0xff] }
  0x28   :  { %1496 = vmatprep.subr.bf16.mxu0 %v1829_v0  ;;  %1204 = vmatprep.mubr.msk.f32.mxu0 %vm1830_vm0, %v1831_v1  ;;  %v202_v3 = vld [vmem:[#allocation2 + $0x8] sm:$0xff]  ;;  %v203_v4 = vld [vmem:[#allocation2 + $0x10] sm:$0xff]  ;;  %v204_v6 = vld [vmem:[#allocation2 + $0x18] sm:$0xff]  ;;  %vm71_vm1 = vcmask 64512  }
  0x29   :  { %v1907_v5 = vpack.c.bf16 %v202_v3, %v201_v2  ;;  %v1910_v7 = vpack.c.bf16 %v204_v6, %v203_v4  ;;  %v205_v8 = vld [vmem:[#allocation2 + $0x20] sm:$0xff]  ;;  %v206_v9 = vld [vmem:[#allocation2 + $0x28] sm:$0xff]  ;;  %v207_v14 = vld [vmem:[#allocation2 + $0x30] sm:$0xff] }
  0x2a   :  { %v63_v10 = vld [vmem:[%s2184_s1] sm:$0xff]  ;;  %v56_v12 = vld [vmem:[%s2183_s0 + $0x8] sm:$0xff]  ;;  %v1924_v13 = vpack.c.bf16 %v206_v9, %v205_v8  ;;  %v208_v15 = vld [vmem:[#allocation2 + $0x38] sm:$0xff] }
  0x2b   :  { %1498 = vmatpush3.bf16.msra.mxu0 %v1907_v5  ;;  %1158 = vmatprep.subr.mxu1 %v63_v10  ;;  %v55_v11 = vld [vmem:[%s2183_s0] sm:$0xff]  ;;  %v1932_v16 = vpack.c.bf16 %v208_v15, %v207_v14  ;;  %v210_v18 = vld [vmem:[#allocation2 + $0x48] sm:$0xff]  ;;  %v211_v20 = vld [vmem:[#allocation2 + $0x50] sm:$0xff] }
  0x2c   :  { %1499 = vmatprep.subr.bf16.mxu0 %v1829_v0  ;;  %1159 = vmatpush3.msra.mxu1 %v63_v10  ;;  %v209_v17 = vld [vmem:[#allocation2 + $0x40] sm:$0xff]  ;;  %v212_v21 = vld [vmem:[#allocation2 + $0x58] sm:$0xff]  ;;  %v214_v24 = vld [vmem:[#allocation2 + $0x68] sm:$0xff] }
  0x2d   :  { %1160 = vmatprep.mubr.msk.f32.mxu1 %vm71_vm1, %v55_v11  ;;  %1544 = vmatprep.subr.bf16.mxu1 %v1829_v0  ;;  %v1938_v19 = vpack.c.bf16 %v210_v18, %v209_v17  ;;  %v1944_v22 = vpack.c.bf16 %v212_v21, %v211_v20  ;;  %v213_v23 = vld [vmem:[#allocation2 + $0x60] sm:$0xff]  ;;  %v215_v26 = vld [vmem:[#allocation2 + $0x70] sm:$0xff]  ;;  %v216_v27 = vld [vmem:[#allocation2 + $0x78] sm:$0xff] }
  0x2e   :  { %1161 = vmatmul.mubr.msk.f32.vlgmr.msra.gmra.mrb[0].mxu1 %vm71_vm1, %v56_v12  ;;  %v1950_v25 = vpack.c.bf16 %v214_v24, %v213_v23  ;;  %v1956_v28 = vpack.c.bf16 %v216_v27, %v215_v26  ;;  %v57_v29 = vld [vmem:[%s2183_s0 + $0x10] sm:$0xff]  ;;  %v58_v30 = vld [vmem:[%s2183_s0 + $0x18] sm:$0xff]  ;;  %v59_v31 = vld [vmem:[%s2183_s0 + $0x20] sm:$0xff] }
  0x2f   :  { %1501 = vmatpush3.bf16.msra.mxu0 %v1910_v7  ;;  %1546 = vmatpush3.bf16.msra.mxu1 %v1907_v5  ;;  %v60_v32 = vld [vmem:[%s2183_s0 + $0x28] sm:$0xff]  ;;  %v61_v33 = vld [vmem:[%s2183_s0 + $0x30] sm:$0xff]  ;;  %v62_v34 = vld [vmem:[%s2183_s0 + $0x38] sm:$0xff] }
  0x30   :  { %1502 = vmatprep.subr.bf16.mxu0 %v1829_v0  ;;  %1547 = vmatprep.subr.bf16.mxu1 %v1829_v0  ;;  %v2015_v37 = vld [vmem:[%s2185_s2] ss:$0 sm:$0xff]  ;;  %v811_v11 = vld [vmem:[#allocation5 + $0x10] sm:$0xff]  ;;  %v812_v12 = vld [vmem:[#allocation5 + $0x18] sm:$0xff] }
  0x31   :  { %1163 = vmatprep.mubr.msk.f32.mxu1 %vm71_vm1, %v57_v29  ;;  %v813_v17 = vld [vmem:[#allocation5 + $0x20] sm:$0xff]  ;;  %v814_v18 = vld [vmem:[#allocation5 + $0x28] sm:$0xff]  ;;  %v816_v20 = vld [vmem:[#allocation5 + $0x38] sm:$0xff] }
  0x32   :  { %1164 = vmatmul.mubr.msk.f32.gmra.mrb[2].mxu1 %vm71_vm1, %v58_v30  ;;  %v818_v23 = vld [vmem:[#allocation5 + $0x48] sm:$0xff]  ;;  %v820_v26 = vld [vmem:[#allocation5 + $0x58] sm:$0xff] }
  0x33   :  { %1504 = vmatpush3.bf16.msra.mxu0 %v1924_v13  ;;  %1549 = vmatpush3.bf16.msra.mxu1 %v1910_v7  ;;  %v822_v29 = vld [vmem:[#allocation5 + $0x68] sm:$0xff] }
  0x34   :  { %1505 = vmatprep.subr.bf16.mxu0 %v1829_v0  ;;  %1550 = vmatprep.subr.bf16.mxu1 %v1829_v0 }
  0x35   :  { %1166 = vmatprep.mubr.msk.f32.mxu1 %vm71_vm1, %v59_v31  ;;  %v823_v31 = vld [vmem:[#allocation5 + $0x70] sm:$0xff] }
  0x36   :  { %1167 = vmatmul.mubr.msk.f32.gmra.mrb[4].mxu1 %vm71_vm1, %v60_v32  ;;  %v824_v32 = vld [vmem:[#allocation5 + $0x78] sm:$0xff] }
  0x37   :  { %1507 = vmatpush3.bf16.msra.mxu0 %v1932_v16  ;;  %1552 = vmatpush3.bf16.msra.mxu1 %v1924_v13 }
  0x38   :  { %1508 = vmatprep.subr.bf16.mxu0 %v1829_v0  ;;  %1553 = vmatprep.subr.bf16.mxu1 %v1829_v0 }
  0x39   :  { %1169 = vmatprep.mubr.msk.f32.mxu1 %vm71_vm1, %v61_v33  ;;  %v1716_v33 = vpack.c.bf16 %v824_v32, %v823_v31 }
  0x3a   :  { %1170 = vmatmul.mubr.msk.f32.gmra.mrb[6].mxu1 %vm71_vm1, %v62_v34 }
  0x3b   :  { %1510 = vmatpush3.bf16.msra.mxu0 %v1938_v19  ;;  %1555 = vmatpush3.bf16.msra.mxu1 %v1932_v16 }
  0x3c   :  { %1511 = vmatprep.subr.bf16.mxu0 %v1829_v0  ;;  %1556 = vmatprep.subr.bf16.mxu1 %v1829_v0 }
  0x3d   :  { %1274 = vmatprep.mubr.msk.f32.mxu1 %vm1830_vm0, %v1831_v1 }
  0x3f   :  { %1513 = vmatpush3.bf16.msra.mxu0 %v1944_v22  ;;  %1558 = vmatpush3.bf16.msra.mxu1 %v1938_v19 }
  0x40   :  { %1514 = vmatprep.subr.bf16.mxu0 %v1829_v0  ;;  %1559 = vmatprep.subr.bf16.mxu1 %v1829_v0 }
  0x43   :  { %1516 = vmatpush3.bf16.msra.mxu0 %v1950_v25  ;;  %1561 = vmatpush3.bf16.msra.mxu1 %v1944_v22 }
  0x44   :  { %1517 = vmatprep.subr.bf16.mxu0 %v1829_v0  ;;  %1562 = vmatprep.subr.bf16.mxu1 %v1829_v0 }
  0x47   :  { %1519 = vmatpush3.bf16.msra.mxu0 %v1956_v28  ;;  %1564 = vmatpush3.bf16.msra.mxu1 %v1950_v25 }
  0x48   :  { %1520 = vmatprep.subr.bf16.mxu0 %v1829_v0  ;;  %1565 = vmatprep.subr.bf16.mxu1 %v1829_v0 }
  0x4a   :  { %1205 = vmatmul.mubr.f32.vlgmr.msra.gmra.mrb[0].mxu0 %v1831_v1 }
  0x4b   :  { %1522 = vmatpush3.bf16.msra.mxu0 %v1907_v5  ;;  %1239 = vmatprep.mubr.msk.f32.mxu0 %vm1830_vm0, %v1831_v1 }
  0x4c   :  { %1523 = vmatprep.subr.bf16.mxu0 %v1829_v0  ;;  %1567 = vmatpush3.bf16.msra.mxu1 %v1956_v28 }
  0x4d   :  { %1592 = vmatprep.subr.bf16.mxu1 %v1829_v0 }
  0x4f   :  { %1525 = vmatpush3.bf16.msra.mxu0 %v1910_v7 }
  0x50   :  { %1526 = vmatprep.subr.bf16.mxu0 %v1829_v0 }
  0x53   :  { %1528 = vmatpush3.bf16.msra.mxu0 %v1924_v13 }
  0x54   :  { %1529 = vmatprep.subr.bf16.mxu0 %v1829_v0 }
  0x57   :  { %1531 = vmatpush3.bf16.msra.mxu0 %v1932_v16 }
  0x58   :  { %1532 = vmatprep.subr.bf16.mxu0 %v1829_v0 }
  0x5b   :  { %1534 = vmatpush3.bf16.msra.mxu0 %v1938_v19 }
  0x5c   :  { %1535 = vmatprep.subr.bf16.mxu0 %v1829_v0 }
  0x5f   :  { %1537 = vmatpush3.bf16.msra.mxu0 %v1944_v22 }
  0x60   :  { %1538 = vmatprep.subr.bf16.mxu0 %v1829_v0 }
  0x63   :  { %1540 = vmatpush3.bf16.msra.mxu0 %v1950_v25 }
  0x64   :  { %1541 = vmatprep.subr.bf16.mxu0 %v1829_v0 }
  0x67   :  { %1543 = vmatpush3.bf16.msra.mxu0 %v1956_v28 }
  0x68   :  { %1568 = vmatprep.subr.bf16.mxu0 %v1829_v0 }
 0x101   :  { %v1162_v35 = vpop.f32.mrb[0].mxu1 }
 0x102   :  { %v162_v36 = vpop.f32.mrb[1].mxu1  ;;  %v168_v49 = vadd.f32 %v1162_v35, %v2015_v37 }
 0x103   :  { %v163_v38 = vadd.f32 %v2015_v37, %v162_v36 }
 0x105   :  { %v1165_v43 = vpop.f32.mrb[2].mxu1 }
 0x106   :  { %v172_v44 = vpop.f32.mrb[3].mxu1  ;;  %v178_v59 = vadd.f32 %v1165_v43, %v2015_v37 }
 0x107   :  { %v173_v54 = vadd.f32 %v2015_v37, %v172_v44 }
 0x109   :  { %v2040_v45 = vpop.f32.mrb[4].mxu1 }
 0x10a   :  { %v2042_v46 = vpop.f32.mrb[5].mxu1  ;;  %v188_v9 = vadd.f32 %v2040_v45, %v2015_v37 }
 0x10b   :  { %v183_v2 = vadd.f32 %v2015_v37, %v2042_v46 }
 0x10d   :  { %v2044_v47 = vpop.f32.mrb[6].mxu1 }
 0x10e   :  { %v2046_v48 = vpop.f32.mrb[7].mxu1 }
 0x10f   :  { %v193_v34 = vadd.f32 %v2015_v37, %v2046_v48 }
 0x11d   :  { %v283_v39 = vpop.f32.mrb[0].mxu0 }
 0x11e   :  { %v287_v40 = vadd.f32 %v283_v39, %v163_v38  ;;  %v1206_v41 = vpop.f32.mrb[1].mxu0 }
 0x120   :  { %v2018_v42 = vmax.f32 %v287_v40, 0.0  ;;  %v988_v40 = vld [vmem:[%s2188_s5] ss:$0 sm:$0xff]  ;;  %s1832_s5 = smov [#allocation8]  }
 0x121   :  { %s962_s23 = sshll.u32 %s1832_s5, 4  ;;  %s963_s23 = int_to_ptr.vmem [resolvable:$true] %s962_s23 }
 0x122   :  { %289 = vst [vmem:[#allocation8] sm:$0xff] %v2018_v42  ;;  %1240 = vmatmul.mubr.f32.vlgmr.msra.gmra.mrb[2].mxu0 %v2018_v42  ;;  %s1773_s24 = scalar_lea.vmem %s963_s23, 1024  ;;  %p1778_p3 = scmp.lt.s32.totalorder %s963_s23, %s963_s23 }
 0x123   :  { %1570 = vmatpush3.bf16.msra.mxu0 %v1907_v5  ;;  %1309 = vmatprep.mubr.msk.f32.mxu0 %vm1830_vm0, %v1831_v1  ;;  %p1774_p2 = scmp.ne.s32.totalorder %s963_s23, %s1773_s24  ;;  %p1779_p4 = scmp.lt.s32.totalorder %s1773_s24, %s1773_s24 }
 0x124   :  { %1571 = vmatprep.subr.bf16.mxu0 %v1829_v0 }
 0x125   :  { %p1780_p5 = por %p1779_p4, %p1778_p3 }
 0x127   :  { %1573 = vmatpush3.bf16.msra.mxu0 %v1910_v7  ;;  %p1781_p6 = pnand %p1780_p5, %p1774_p2 }
 0x128   :  { %1574 = vmatprep.subr.bf16.mxu0 %v1829_v0 }
 0x12b   :  { %1576 = vmatpush3.bf16.msra.mxu0 %v1924_v13 }
 0x12c   :  { %1577 = vmatprep.subr.bf16.mxu0 %v1829_v0 }
 0x12f   :  { %1579 = vmatpush3.bf16.msra.mxu0 %v1932_v16 }
 0x130   :  { %1580 = vmatprep.subr.bf16.mxu0 %v1829_v0 }
 0x133   :  { %1582 = vmatpush3.bf16.msra.mxu0 %v1938_v19 }
 0x134   :  { %1583 = vmatprep.subr.bf16.mxu0 %v1829_v0 }
 0x137   :  { %1585 = vmatpush3.bf16.msra.mxu0 %v1944_v22 }
 0x138   :  { %1586 = vmatprep.subr.bf16.mxu0 %v1829_v0 }
 0x13b   :  { %1588 = vmatpush3.bf16.msra.mxu0 %v1950_v25 }
 0x13c   :  { %1589 = vmatprep.subr.bf16.mxu0 %v1829_v0 }
 0x13f   :  { %1591 = vmatpush3.bf16.msra.mxu0 %v1956_v28 }
 0x140   :  { %1616 = vmatprep.subr.bf16.mxu0 %v1829_v0 }
 0x1f5   :  { %v356_v50 = vpop.f32.mrb[2].mxu0 }
 0x1f6   :  { %v360_v51 = vadd.f32 %v356_v50, %v168_v49  ;;  %v1241_v52 = vpop.f32.mrb[3].mxu0 }
 0x1f8   :  { %v2049_v53 = vmax.f32 %v360_v51, 0.0 }
 0x1fa   :  { %362 = vst [vmem:[#allocation8 + $0x8] sm:$0xff] %v2049_v53  ;;  %1275 = vmatmul.mubr.f32.vlgmr.msra.gmra.mrb[8].mxu1 %v2049_v53 }
 0x1fb   :  { %1594 = vmatpush3.bf16.msra.mxu1 %v1907_v5  ;;  %1344 = vmatprep.mubr.msk.f32.mxu1 %vm1830_vm0, %v1831_v1 }
 0x1fc   :  { %1595 = vmatprep.subr.bf16.mxu1 %v1829_v0 }
 0x1ff   :  { %1597 = vmatpush3.bf16.msra.mxu1 %v1910_v7 }
 0x200   :  { %1598 = vmatprep.subr.bf16.mxu1 %v1829_v0 }
 0x203   :  { %1600 = vmatpush3.bf16.msra.mxu1 %v1924_v13 }
 0x204   :  { %1601 = vmatprep.subr.bf16.mxu1 %v1829_v0 }
 0x207   :  { %1603 = vmatpush3.bf16.msra.mxu1 %v1932_v16 }
 0x208   :  { %1604 = vmatprep.subr.bf16.mxu1 %v1829_v0 }
 0x20b   :  { %1606 = vmatpush3.bf16.msra.mxu1 %v1938_v19 }
 0x20c   :  { %1607 = vmatprep.subr.bf16.mxu1 %v1829_v0 }
 0x20f   :  { %1609 = vmatpush3.bf16.msra.mxu1 %v1944_v22 }
 0x210   :  { %1610 = vmatprep.subr.bf16.mxu1 %v1829_v0 }
 0x213   :  { %1612 = vmatpush3.bf16.msra.mxu1 %v1950_v25 }
 0x214   :  { %1613 = vmatprep.subr.bf16.mxu1 %v1829_v0 }
 0x217   :  { %1615 = vmatpush3.bf16.msra.mxu1 %v1956_v28 }
 0x218   :  { %1640 = vmatprep.subr.bf16.mxu1 %v1829_v0 }
 0x2cd   :  { %v429_v55 = vpop.f32.mrb[8].mxu1 }
 0x2ce   :  { %v433_v56 = vadd.f32 %v429_v55, %v173_v54  ;;  %v1276_v57 = vpop.f32.mrb[9].mxu1  ;;  %v198_v54 = vadd.f32 %v2044_v47, %v2015_v37 }
 0x2d0   :  { %v2072_v58 = vmax.f32 %v433_v56, 0.0 }
 0x2d2   :  { %435 = vst [vmem:[#allocation8 + $0x10] sm:$0xff] %v2072_v58  ;;  %1310 = vmatmul.mubr.f32.vlgmr.msra.gmra.mrb[4].mxu0 %v2072_v58 }
 0x2d3   :  { %1618 = vmatpush3.bf16.msra.mxu0 %v1907_v5  ;;  %1379 = vmatprep.mubr.msk.f32.mxu0 %vm1830_vm0, %v1831_v1 }
 0x2d4   :  { %1619 = vmatprep.subr.bf16.mxu0 %v1829_v0 }
 0x2d7   :  { %1621 = vmatpush3.bf16.msra.mxu0 %v1910_v7 }
 0x2d8   :  { %1622 = vmatprep.subr.bf16.mxu0 %v1829_v0 }
 0x2db   :  { %1624 = vmatpush3.bf16.msra.mxu0 %v1924_v13 }
 0x2dc   :  { %1625 = vmatprep.subr.bf16.mxu0 %v1829_v0 }
 0x2df   :  { %1627 = vmatpush3.bf16.msra.mxu0 %v1932_v16 }
 0x2e0   :  { %1628 = vmatprep.subr.bf16.mxu0 %v1829_v0 }
 0x2e3   :  { %1630 = vmatpush3.bf16.msra.mxu0 %v1938_v19 }
 0x2e4   :  { %1631 = vmatprep.subr.bf16.mxu0 %v1829_v0 }
 0x2e7   :  { %1633 = vmatpush3.bf16.msra.mxu0 %v1944_v22 }
 0x2e8   :  { %1634 = vmatprep.subr.bf16.mxu0 %v1829_v0 }
 0x2eb   :  { %1636 = vmatpush3.bf16.msra.mxu0 %v1950_v25 }
 0x2ec   :  { %1637 = vmatprep.subr.bf16.mxu0 %v1829_v0 }
 0x2ef   :  { %1639 = vmatpush3.bf16.msra.mxu0 %v1956_v28 }
 0x2f0   :  { %1664 = vmatprep.subr.bf16.mxu0 %v1829_v0 }
 0x3a5   :  { %v502_v60 = vpop.f32.mrb[4].mxu0 }
 0x3a6   :  { %v506_v61 = vadd.f32 %v502_v60, %v178_v59  ;;  %v1311_v62 = vpop.f32.mrb[5].mxu0 }
 0x3a8   :  { %v2095_v63 = vmax.f32 %v506_v61, 0.0 }
 0x3aa   :  { %508 = vst [vmem:[#allocation8 + $0x18] sm:$0xff] %v2095_v63  ;;  %1345 = vmatmul.mubr.f32.vlgmr.msra.gmra.mrb[10].mxu1 %v2095_v63 }
 0x3ab   :  { %1642 = vmatpush3.bf16.msra.mxu1 %v1907_v5  ;;  %1414 = vmatprep.mubr.msk.f32.mxu1 %vm1830_vm0, %v1831_v1 }
 0x3ac   :  { %1643 = vmatprep.subr.bf16.mxu1 %v1829_v0 }
 0x3af   :  { %1645 = vmatpush3.bf16.msra.mxu1 %v1910_v7 }
 0x3b0   :  { %1646 = vmatprep.subr.bf16.mxu1 %v1829_v0 }
 0x3b3   :  { %1648 = vmatpush3.bf16.msra.mxu1 %v1924_v13 }
 0x3b4   :  { %1649 = vmatprep.subr.bf16.mxu1 %v1829_v0 }
 0x3b7   :  { %1651 = vmatpush3.bf16.msra.mxu1 %v1932_v16 }
 0x3b8   :  { %1652 = vmatprep.subr.bf16.mxu1 %v1829_v0 }
 0x3bb   :  { %1654 = vmatpush3.bf16.msra.mxu1 %v1938_v19 }
 0x3bc   :  { %1655 = vmatprep.subr.bf16.mxu1 %v1829_v0 }
 0x3bf   :  { %1657 = vmatpush3.bf16.msra.mxu1 %v1944_v22 }
 0x3c0   :  { %1658 = vmatprep.subr.bf16.mxu1 %v1829_v0 }
 0x3c3   :  { %1660 = vmatpush3.bf16.msra.mxu1 %v1950_v25 }
 0x3c4   :  { %1661 = vmatprep.subr.bf16.mxu1 %v1829_v0 }
 0x3c7   :  { %1663 = vmatpush3.bf16.msra.mxu1 %v1956_v28 }
 0x47d   :  { %v575_v3 = vpop.f32.mrb[10].mxu1 }
 0x47e   :  { %v579_v4 = vadd.f32 %v575_v3, %v183_v2  ;;  %v1346_v6 = vpop.f32.mrb[11].mxu1 }
 0x480   :  { %v2118_v8 = vmax.f32 %v579_v4, 0.0 }
 0x482   :  { %581 = vst [vmem:[#allocation8 + $0x20] sm:$0xff] %v2118_v8  ;;  %1380 = vmatmul.mubr.f32.vlgmr.msra.gmra.mrb[6].mxu0 %v2118_v8 }
 0x483   :  { %1666 = vmatpush3.bf16.msra.mxu0 %v1907_v5  ;;  %1449 = vmatprep.mubr.msk.f32.mxu0 %vm1830_vm0, %v1831_v1  ;;  %v809_v1 = vld [vmem:[#allocation5] sm:$0xff]  ;;  %v810_v5 = vld [vmem:[#allocation5 + $0x8] sm:$0xff] }
 0x484   :  { %1667 = vmatprep.subr.bf16.mxu0 %v1829_v0 }
 0x487   :  { %1669 = vmatpush3.bf16.msra.mxu0 %v1910_v7  ;;  %v1688_v7 = vpack.c.bf16 %v810_v5, %v809_v1 }
 0x488   :  { %1670 = vmatprep.subr.bf16.mxu0 %v1829_v0 }
 0x489   :  { %1689 = vmatprep.subr.bf16.mxu1 %v1688_v7 }
 0x48b   :  { %1672 = vmatpush3.bf16.msra.mxu0 %v1924_v13 }
 0x48c   :  { %1673 = vmatprep.subr.bf16.mxu0 %v1829_v0 }
 0x48f   :  { %1675 = vmatpush3.bf16.msra.mxu0 %v1932_v16  ;;  %v1692_v16 = vpack.c.bf16 %v812_v12, %v811_v11 }
 0x490   :  { %1676 = vmatprep.subr.bf16.mxu0 %v1829_v0 }
 0x493   :  { %1678 = vmatpush3.bf16.msra.mxu0 %v1938_v19  ;;  %v815_v19 = vld [vmem:[#allocation5 + $0x30] sm:$0xff] }
 0x494   :  { %1679 = vmatprep.subr.bf16.mxu0 %v1829_v0  ;;  %v1700_v21 = vpack.c.bf16 %v816_v20, %v815_v19 }
 0x497   :  { %1681 = vmatpush3.bf16.msra.mxu0 %v1944_v22  ;;  %v817_v22 = vld [vmem:[#allocation5 + $0x40] sm:$0xff] }
 0x498   :  { %1682 = vmatprep.subr.bf16.mxu0 %v1829_v0  ;;  %v1704_v24 = vpack.c.bf16 %v818_v23, %v817_v22 }
 0x49b   :  { %1684 = vmatpush3.bf16.msra.mxu0 %v1950_v25  ;;  %v819_v25 = vld [vmem:[#allocation5 + $0x50] sm:$0xff] }
 0x49c   :  { %1685 = vmatprep.subr.bf16.mxu0 %v1829_v0  ;;  %v1696_v0 = vpack.c.bf16 %v814_v18, %v813_v17  ;;  %v1708_v27 = vpack.c.bf16 %v820_v26, %v819_v25 }
 0x49f   :  { %1687 = vmatpush3.bf16.msra.mxu0 %v1956_v28  ;;  %v821_v28 = vld [vmem:[#allocation5 + $0x60] sm:$0xff] }
 0x4a0   :  { %v1712_v30 = vpack.c.bf16 %v822_v29, %v821_v28 }
 0x555   :  { %v648_v10 = vpop.f32.mrb[6].mxu0 }
 0x556   :  { %v652_v13 = vadd.f32 %v648_v10, %v188_v9  ;;  %v1381_v14 = vpop.f32.mrb[7].mxu0 }
 0x558   :  { %v653_v15 = vmax.f32 %v652_v13, 0.0 }
 0x55a   :  { %654 = vst [vmem:[#allocation8 + $0x28] sm:$0xff] %v653_v15  ;;  %1415 = vmatmul.mubr.f32.vlgmr.msra.gmra.mrb[12].mxu1 %v653_v15 }
 0x55b   :  { %1691 = vmatpush3.bf16.msra.mxu1 %v1688_v7  ;;  %1484 = vmatprep.mubr.f32.mxu1 %v2018_v42 }
 0x55c   :  { %1693 = vmatprep.subr.bf16.mxu1 %v1692_v16 }
 0x55f   :  { %1695 = vmatpush3.bf16.msra.mxu1 %v1692_v16 }
 0x560   :  { %1697 = vmatprep.subr.bf16.mxu1 %v1696_v0 }
 0x563   :  { %1699 = vmatpush3.bf16.msra.mxu1 %v1696_v0 }
 0x564   :  { %1701 = vmatprep.subr.bf16.mxu1 %v1700_v21 }
 0x567   :  { %1703 = vmatpush3.bf16.msra.mxu1 %v1700_v21 }
 0x568   :  { %1705 = vmatprep.subr.bf16.mxu1 %v1704_v24 }
 0x56b   :  { %1707 = vmatpush3.bf16.msra.mxu1 %v1704_v24 }
 0x56c   :  { %1709 = vmatprep.subr.bf16.mxu1 %v1708_v27 }
 0x56f   :  { %1711 = vmatpush3.bf16.msra.mxu1 %v1708_v27 }
 0x570   :  { %1713 = vmatprep.subr.bf16.mxu1 %v1712_v30 }
 0x573   :  { %1715 = vmatpush3.bf16.msra.mxu1 %v1712_v30 }
 0x574   :  { %1717 = vmatprep.subr.bf16.mxu1 %v1716_v33 }
 0x577   :  { %1719 = vmatpush3.bf16.msra.mxu1 %v1716_v33 }
 0x57a   :  { %1485 = vmatmul.mubr.f32.vlgmr.msra.gmra.mrb[14].mxu1 %v2049_v53 }
 0x57b   :  { %1487 = vmatprep.mubr.f32.mxu1 %v2072_v58 }
 0x57e   :  { %1488 = vmatmul.mubr.f32.gmra.mrb[16].mxu1 %v2095_v63 }
 0x57f   :  { %1490 = vmatprep.mubr.f32.mxu1 %v2118_v8 }
 0x582   :  { %1491 = vmatmul.mubr.f32.gmra.mrb[18].mxu1 %v653_v15 }
 0x62d   :  { %v721_v35 = vpop.f32.mrb[12].mxu1 }
 0x62e   :  { %v725_v36 = vadd.f32 %v721_v35, %v193_v34  ;;  %v1416_v38 = vpop.f32.mrb[13].mxu1 }
 0x630   :  { %v726_v39 = vmax.f32 %v725_v36, 0.0 }
 0x632   :  { %727 = vst [vmem:[#allocation8 + $0x30] sm:$0xff] %v726_v39  ;;  %1450 = vmatmul.mubr.f32.vlgmr.msra.gmra.mrb[8].mxu0 %v726_v39  ;;  %1493 = vmatprep.mubr.f32.mxu1 %v726_v39 }
 0x64d   :  { %v1486_v41 = vpop.f32.mrb[14].mxu1 }
 0x64e   :  { %v904_v42 = vadd.f32 %v1486_v41, %v988_v40  ;;  %v898_v43 = vpop.f32.mrb[15].mxu1 }
 0x64f   :  { %v899_v44 = vadd.f32 %v988_v40, %v898_v43 }
 0x650   :  { %938 = vst [vmem:[#allocation7 + $0x8] sm:$0xff] %v904_v42 }
 0x651   :  { %937 = vst [vmem:[#allocation7] sm:$0xff] %v899_v44  ;;  %v1489_v45 = vpop.f32.mrb[16].mxu1 }
 0x652   :  { %v914_v46 = vadd.f32 %v1489_v45, %v988_v40  ;;  %v908_v48 = vpop.f32.mrb[17].mxu1 }
 0x653   :  { %v909_v49 = vadd.f32 %v988_v40, %v908_v48 }
 0x654   :  { %940 = vst [vmem:[#allocation7 + $0x18] sm:$0xff] %v914_v46 }
 0x655   :  { %939 = vst [vmem:[#allocation7 + $0x10] sm:$0xff] %v909_v49  ;;  %v1492_v50 = vpop.f32.mrb[18].mxu1 }
 0x656   :  { %v924_v51 = vadd.f32 %v1492_v50, %v988_v40  ;;  %v918_v52 = vpop.f32.mrb[19].mxu1 }
 0x657   :  { %v919_v53 = vadd.f32 %v988_v40, %v918_v52 }
 0x658   :  { %942 = vst [vmem:[#allocation7 + $0x28] sm:$0xff] %v924_v51 }
 0x659   :  { %941 = vst [vmem:[#allocation7 + $0x20] sm:$0xff] %v919_v53 }
 0x705   :  { %v794_v55 = vpop.f32.mrb[8].mxu0 }
 0x706   :  { %v798_v56 = vadd.f32 %v794_v55, %v198_v54  ;;  %v1451_v57 = vpop.f32.mrb[9].mxu0 }
 0x708   :  { %v799_v58 = vmax.f32 %v798_v56, 0.0 }
 0x70a   :  { %800 = vst [vmem:[#allocation8 + $0x38] sm:$0xff] %v799_v58  ;;  %1494 = vmatmul.mubr.f32.gmra.mrb[20].mxu1 %v799_v58 }
 0x70b   :  { %1784 = shalt.err (!%p1781_p6)
}
 0x70c   :  { %s1785_s4 = scalar_lea.hbm %s2190_s7, 1024 }
 0x70d   :  { %p1786_p7 = scmp.ne.s32.totalorder %s2190_s7, %s1785_s4  ;;  %p1789_p8 = scmp.lt.u32.totalorder %s1785_s4, %s2190_s7 }
 0x70f   :  { %p1791_p9 = pnand %p1789_p8, %p1786_p7 }
 0x711   :  { %1794 = shalt.err (!%p1791_p9)
}
 0x712   :  { %968 = dma.vmem_to_hbm [thread:$0]  %s963_s23, 1024, %s2190_s7, [#allocation9], %s1826_s11, %s1826_s11, %s1827_s12  }
 0x713   :  { %s1833_s8 = smov [#allocation7]  }
 0x714   :  { %s950_s9 = sshll.u32 %s1833_s8, 4  ;;  %s951_s9 = int_to_ptr.vmem [resolvable:$true] %s950_s9 }
 0x715   :  { %s1795_s10 = scalar_lea.vmem %s951_s9, 1024  ;;  %p1800_p11 = scmp.lt.s32.totalorder %s951_s9, %s951_s9 }
 0x716   :  { %p1796_p10 = scmp.ne.s32.totalorder %s951_s9, %s1795_s10  ;;  %p1801_p12 = scmp.lt.s32.totalorder %s1795_s10, %s1795_s10 }
 0x718   :  { %p1802_p13 = por %p1801_p12, %p1800_p11 }
 0x71a   :  { %p1803_p0 = pnand %p1802_p13, %p1796_p10 }
 0x7dd   :  { %v1495_v37 = vpop.f32.mrb[20].mxu1 }
 0x7de   :  { %v934_v47 = vadd.f32 %v1495_v37, %v988_v40  ;;  %v928_v59 = vpop.f32.mrb[21].mxu1 }
 0x7df   :  { %v929_v60 = vadd.f32 %v988_v40, %v928_v59 }
 0x7e0   :  { %944 = vst [vmem:[#allocation7 + $0x38] sm:$0xff] %v934_v47 }
 0x7e1   :  { %943 = vst [vmem:[#allocation7 + $0x30] sm:$0xff] %v929_v60 }
 0x7e2   :  { %1806 = shalt.err (!%p1803_p0)
}
 0x7e3   :  { %s1807_s7 = scalar_lea.hbm %s2189_s6, 1024 }
 0x7e4   :  { %p1808_p1 = scmp.ne.s32.totalorder %s2189_s6, %s1807_s7  ;;  %p1811_p2 = scmp.lt.u32.totalorder %s1807_s7, %s2189_s6 }
 0x7e6   :  { %p1813_p3 = pnand %p1811_p2, %p1808_p1 }
 0x7e8   :  { %1816 = shalt.err (!%p1813_p3)
}
 0x7e9   :  { %956 = dma.vmem_to_hbm [thread:$0]  %s951_s9, 1024, %s2189_s6, [#allocation4], %s1826_s11, %s1826_s11, %s1827_s12  }
 0x7ea   :  { %1821 = dma.done.wait [#allocation4], 1024  }
 0x7eb   :  { %1822 = vsyncadd [#allocation4], 4294966272 }
 0x7ec   :  { %1823 = dma.done.wait [#allocation9], 1024  }
 0x7ed   :  { %1824 = vsyncadd [#allocation9], 4294966272 }
 0x7ee   :  { %975 = vsyncpa [#allocation3], 1 }
 0x7ef   :  { %976 = vsyncpa [#allocation6], 1 }
 0x7f0   :  { %977 = vsyncpa [#allocation4], 1 }
 0x7f1   :  { %978 = vsyncpa [#allocation9], 1 }

</bundles_post_ra>
